<compile_context>
chip_gen: v7x
topology: tpu7x:2x2x1
jax: 0.10.0
libtpu: 0.0.40
codegen_flags: <defaults>
</compile_context>

<pallas_src>
import jax
import jax.numpy as jnp
from jax.experimental import pallas as pl
from jax.experimental.pallas import tpu as pltpu


def _round_up(n, m):
    return ((n + m - 1) // m) * m


def _batm_kernel(x_ref, m_ref, w1_ref, b1_ref, w2_ref, b2_ref, vec_ref, wgt_ref):
    tb, fp, ep = x_ref.shape
    kp = w2_ref.shape[1]

    x = x_ref[...]                                   # (tb, fp, ep), compute dtype
    x2 = x.reshape(tb * fp, ep)

    # topic_layer: Linear(E,H) -> tanh -> Linear(H,K); MXU matmuls with f32 accumulation,
    # tanh / softmax kept in f32.
    h = jnp.tanh(jnp.dot(x2, w1_ref[...], preferred_element_type=jnp.float32)
                 + b1_ref[...])                      # (tb*fp, hp) f32
    s = (jnp.dot(h.astype(w2_ref.dtype), w2_ref[...],
                 preferred_element_type=jnp.float32)
         + b2_ref[...])                              # (tb*fp, kp) f32
    s = s.reshape(tb, fp, kp)

    # Transposed-softmax layout: F (padded to a 128 multiple) is the lane axis, so the
    # whole mask/max/exp/sum/normalize phase is lane-dense and wgt stores are unmasked.
    st = jnp.swapaxes(s, 1, 2)                       # (tb, kp, fp) f32  (single small transpose)
    st = jnp.where(m_ref[...] > 0.5, st, -1e4)       # mask broadcast from (tb, 1, fp)
    s_max = jnp.max(st, axis=-1, keepdims=True)
    p = jnp.exp(st - s_max)
    denom = jnp.sum(p, axis=-1, keepdims=True)
    w = p * pl.reciprocal(denom, approx=False)       # EUP reciprocal + VPU multiply

    wgt_ref[...] = w.astype(wgt_ref.dtype)

    # Topic vectors: per-batch (kp, ep) = weights @ x (batched MXU matmul, f32 acc).
    vec = jnp.einsum("bkf,bfe->bke", w.astype(x.dtype), x,
                     preferred_element_type=jnp.float32)
    vec_ref[...] = vec.astype(vec_ref.dtype)


def batm_encoder(x, x_mask, w1, b1, w2, b2, *, tb=None,
                 compute_dtype=jnp.bfloat16, vmem_budget_bytes=20 << 20):
    """BATMEncoder.forward.

    x: (B, F, E); x_mask: (B, F).
    w1, b1: torch Linear(E, H) params, shapes (H, E), (H,), H = topic_num*topic_dim.
    w2, b2: torch Linear(H, K) params, shapes (K, H), (K,), K = topic_num.
    Returns (topic_vector (B, K, E), topic_weight (B, K, F)).
    """
    B, F, E = x.shape
    H, K = w1.shape[0], w2.shape[0]
    assert w1.shape == (H, E) and b1.shape == (H,)
    assert w2.shape == (K, H) and b2.shape == (K,)
    out_dtype = x.dtype
    in_dtype = jnp.dtype(compute_dtype if compute_dtype is not None else x.dtype)

    # Lane/sublane-dense padded shapes.  F is the softmax/store lane axis -> 128 multiple.
    Fp = _round_up(F, 128)
    Ep = _round_up(E, 128)
    Hp = _round_up(H, 256) if H > 128 else _round_up(H, 128)   # 256-wide N for 2x256 MXUs
    Kp = _round_up(K, 8)

    isz_in = in_dtype.itemsize
    isz_out = jnp.dtype(out_dtype).itemsize

    # --- VMEM model: resident weights (single-buffered) + per-batch-row working set.
    resident = (Ep * Hp + Hp * Kp) * isz_in + (Hp + Kp) * 4
    per_row = (2 * Fp * Ep * isz_in              # x tile (double-buffered)
               + 2 * Fp * 4                      # mask tile (double-buffered)
               + Fp * Hp * (4 + isz_in)          # h (f32) + MXU-operand cast
               + 4 * Kp * Fp * 4                 # s / s^T / exp / weights (f32)
               + Kp * Fp * isz_in                # weights cast for the tv matmul
               + Kp * Ep * 4                     # vec accumulator (f32)
               + 2 * Kp * Ep * isz_out           # topic_vector out (double-buffered)
               + 2 * Kp * Fp * isz_out)          # topic_weight out (double-buffered)
    headroom = 2 << 20                           # Mosaic internal scratch

    if tb is None:
        avail = max(vmem_budget_bytes - resident - headroom, per_row)
        tb = max(1, int(avail // per_row))
    tb = int(min(max(tb, 1), B))
    if B >= 4:
        tb = min(tb, -(-B // 4))                 # keep >= 4 grid steps (dual-TC / pipeline)
    # Prefer a divisor of B (within 2x of the cap) so no batch padding is needed.
    for cand in range(tb, max(tb // 2, 1) - 1, -1):
        if B % cand == 0:
            tb = cand
            break
    Bp = _round_up(B, tb)

    # --- one fused pad + cast pass over x (skipped when nothing to do); batch padding is
    #     folded into the same op, no concatenate.
    if (Bp, Fp, Ep) == (B, F, E) and x.dtype == in_dtype:
        xp = x
    else:
        xp = jnp.zeros((Bp, Fp, Ep), in_dtype).at[:B, :F, :E].set(x.astype(in_dtype))
    mp = jnp.zeros((Bp, 1, Fp), jnp.float32).at[:B, 0, :F].set(x_mask.astype(jnp.float32))
    w1t = jnp.zeros((Ep, Hp), in_dtype).at[:E, :H].set(w1.T.astype(in_dtype))
    b1p = jnp.zeros((1, Hp), jnp.float32).at[0, :H].set(b1.astype(jnp.float32))
    w2t = jnp.zeros((Hp, Kp), in_dtype).at[:H, :K].set(w2.T.astype(in_dtype))
    b2p = jnp.zeros((1, Kp), jnp.float32).at[0, :K].set(b2.astype(jnp.float32))

    total_vmem_est = resident + tb * per_row + headroom
    vmem_limit = int(min(max(total_vmem_est + (2 << 20), 32 << 20), 48 << 20))

    # Cost estimate on the true (unpadded) problem size.
    flops = 2 * B * F * (E * H + H * K) + 2 * B * K * F * E
    transcendentals = B * F * H + B * K * F
    bytes_accessed = (B * F * E * isz_in + B * F * 4
                      + (E * H + H * K) * isz_in + (H + K) * 4
                      + B * K * (E + F) * isz_out)

    const_buf = pl.Buffered(1)   # constant-index weights/biases: single resident VMEM buffer

    vec, wgt = pl.pallas_call(
        _batm_kernel,
        out_shape=(jax.ShapeDtypeStruct((Bp, Kp, Ep), out_dtype),
                   jax.ShapeDtypeStruct((Bp, Kp, Fp), out_dtype)),
        grid_spec=pltpu.PrefetchScalarGridSpec(
            num_scalar_prefetch=0,
            grid=(Bp // tb,),
            in_specs=[
                pl.BlockSpec((tb, Fp, Ep), lambda i: (i, 0, 0)),
                pl.BlockSpec((tb, 1, Fp), lambda i: (i, 0, 0)),
                pl.BlockSpec((Ep, Hp), lambda i: (0, 0), pipeline_mode=const_buf),
                pl.BlockSpec((1, Hp), lambda i: (0, 0), pipeline_mode=const_buf),
                pl.BlockSpec((Hp, Kp), lambda i: (0, 0), pipeline_mode=const_buf),
                pl.BlockSpec((1, Kp), lambda i: (0, 0), pipeline_mode=const_buf),
            ],
            out_specs=[
                pl.BlockSpec((tb, Kp, Ep), lambda i: (i, 0, 0)),
                pl.BlockSpec((tb, Kp, Fp), lambda i: (i, 0, 0)),
            ],
        ),
        compiler_params=pltpu.CompilerParams(
            dimension_semantics=("parallel",),
            vmem_limit_bytes=vmem_limit),
        cost_estimate=pl.CostEstimate(flops=int(flops),
                                      transcendentals=int(transcendentals),
                                      bytes_accessed=int(bytes_accessed)),
    )(xp, mp, w1t, b1p, w2t, b2p)

    return vec[:B, :K, :E], wgt[:B, :K, :F]


def batm_encoder_ref(x, x_mask, w1, b1, w2, b2):
    """Pure-JAX reference reproducing the PyTorch forward."""
    h = jnp.tanh(jnp.einsum("bfe,he->bfh", x, w1) + b1)
    s = jnp.einsum("bfh,kh->bfk", h, w2) + b2
    tw = jnp.swapaxes(s, 1, 2)                           # (B, K, F)
    tw = jnp.where(x_mask[:, None, :] > 0.5, tw, -1e4)
    tw = jax.nn.softmax(tw, axis=-1)
    tv = jnp.einsum("bkf,bfe->bke", tw, x)
    return tv, tw


if __name__ == "__main__":
    key = jax.random.PRNGKey(0)
    kx, kw1, kb1, kw2, kb2 = jax.random.split(key, 5)

    # Small shapes consistent with the module: batch=2, F=8 features, E=32 embedding,
    # topic_num=4, topic_dim=16 -> hidden dim H = 64.
    B, F, E = 2, 8, 32
    topic_num, topic_dim = 4, 16
    H = topic_num * topic_dim

    x = jax.random.normal(kx, (B, F, E), dtype=jnp.float32)
    lengths = jnp.array([8, 5], dtype=jnp.int32)
    x_mask = (jnp.arange(F)[None, :] < lengths[:, None]).astype(jnp.float32)

    w1 = jax.random.normal(kw1, (H, E), dtype=jnp.float32) / jnp.sqrt(E)
    b1 = jax.random.normal(kb1, (H,), dtype=jnp.float32) * 0.01
    w2 = jax.random.normal(kw2, (topic_num, H), dtype=jnp.float32) / jnp.sqrt(H)
    b2 = jax.random.normal(kb2, (topic_num,), dtype=jnp.float32) * 0.01

    ref_vec, ref_wgt = batm_encoder_ref(x, x_mask, w1, b1, w2, b2)

    # f32 path with tb=1 -> 2 grid steps (exercises the batch-tiled pipeline), tight check.
    vec32, wgt32 = batm_encoder(x, x_mask, w1, b1, w2, b2, tb=1,
                                compute_dtype=jnp.float32)
    vec32, wgt32 = jax.block_until_ready((vec32, wgt32))
    assert vec32.shape == (B, topic_num, E) and wgt32.shape == (B, topic_num, F)
    assert jnp.allclose(vec32, ref_vec, atol=1e-4, rtol=1e-4), "topic_vector mismatch (f32)"
    assert jnp.allclose(wgt32, ref_wgt, atol=1e-4, rtol=1e-4), "topic_weight mismatch (f32)"

    # Default path: bf16 streaming of x / weights with f32 accumulation + f32 softmax.
    vecbf, wgtbf = batm_encoder(x, x_mask, w1, b1, w2, b2)
    vecbf, wgtbf = jax.block_until_ready((vecbf, wgtbf))
    assert vecbf.shape == (B, topic_num, E) and wgtbf.shape == (B, topic_num, F)
    assert bool(jnp.all(jnp.isfinite(vecbf))) and bool(jnp.all(jnp.isfinite(wgtbf)))
    assert jnp.allclose(vecbf, ref_vec, atol=1e-1, rtol=1e-1), "topic_vector mismatch (bf16)"
    assert jnp.allclose(wgtbf, ref_wgt, atol=1e-1, rtol=1e-1), "topic_weight mismatch (bf16)"

    print("KERNEL_OK")
</pallas_src>

<mosaic_0001>
module attributes {stable_mosaic.version = 11 : i64} {
  func.func @_batm_kernel(%arg0: i32, %arg1: memref<1x128x128xf32, #tpu.memory_space<vmem>>, %arg2: memref<1x1x128xf32, #tpu.memory_space<vmem>>, %arg3: memref<128x128xf32, #tpu.memory_space<vmem>>, %arg4: memref<1x128xf32, #tpu.memory_space<vmem>>, %arg5: memref<128x8xf32, #tpu.memory_space<vmem>>, %arg6: memref<1x8xf32, #tpu.memory_space<vmem>>, %arg7: memref<1x8x128xf32, #tpu.memory_space<vmem>>, %arg8: memref<1x8x128xf32, #tpu.memory_space<vmem>>) attributes {dimension_semantics = [#tpu.dimension_semantics<parallel>], iteration_bounds = array<i64: 2>, scalar_prefetch = 0 : i64, scratch_operands = 0 : i64, tpu.core_type = #tpu.core_type<tc>, window_params = [{transform_indices = @transform_0, window_bounds = array<i64: 1, 128, 128>}, {transform_indices = @transform_1, window_bounds = array<i64: 1, 1, 128>}, {pipeline_mode = #tpu.pipeline_mode<synchronous>, transform_indices = @transform_2, window_bounds = array<i64: 128, 128>}, {pipeline_mode = #tpu.pipeline_mode<synchronous>, transform_indices = @transform_3, window_bounds = array<i64: 1, 128>}, {pipeline_mode = #tpu.pipeline_mode<synchronous>, transform_indices = @transform_4, window_bounds = array<i64: 128, 8>}, {pipeline_mode = #tpu.pipeline_mode<synchronous>, transform_indices = @transform_5, window_bounds = array<i64: 1, 8>}, {transform_indices = @transform_6, window_bounds = array<i64: 1, 8, 128>}, {transform_indices = @transform_7, window_bounds = array<i64: 1, 8, 128>}]} {
    %c0 = arith.constant 0 : index
    %c0_0 = arith.constant 0 : index
    %c0_1 = arith.constant 0 : index
    %0 = vector.load %arg1[%c0, %c0_0, %c0_1] : memref<1x128x128xf32, #tpu.memory_space<vmem>>, vector<1x128x128xf32>
    %1 = vector.shape_cast %0 : vector<1x128x128xf32> to vector<128x128xf32>
    %c0_2 = arith.constant 0 : index
    %c0_3 = arith.constant 0 : index
    %2 = vector.load %arg3[%c0_2, %c0_3] : memref<128x128xf32, #tpu.memory_space<vmem>>, vector<128x128xf32>
    %cst = arith.constant dense<0.000000e+00> : vector<128x128xf32>
    %3 = tpu.matmul %1, %2, %cst {dimension_numbers = #tpu.dot_dimension_numbers<[1], [0], [0], [1], [0, 0, 1, 1], [], []>} : vector<128x128xf32>, vector<128x128xf32>, vector<128x128xf32> -> vector<128x128xf32>
    %c0_4 = arith.constant 0 : index
    %c0_5 = arith.constant 0 : index
    %4 = vector.load %arg4[%c0_4, %c0_5] : memref<1x128xf32, #tpu.memory_space<vmem>>, vector<1x128xf32>
    %5 = vector.broadcast %4 : vector<1x128xf32> to vector<128x128xf32>
    %6 = arith.addf %3, %5 : vector<128x128xf32>
    %7 = math.tanh %6 : vector<128x128xf32>
    %c0_6 = arith.constant 0 : index
    %c0_7 = arith.constant 0 : index
    %8 = vector.load %arg5[%c0_6, %c0_7] : memref<128x8xf32, #tpu.memory_space<vmem>>, vector<128x8xf32>
    %cst_8 = arith.constant dense<0.000000e+00> : vector<128x8xf32>
    %9 = tpu.matmul %7, %8, %cst_8 {dimension_numbers = #tpu.dot_dimension_numbers<[1], [0], [0], [1], [0, 0, 1, 1], [], []>} : vector<128x128xf32>, vector<128x8xf32>, vector<128x8xf32> -> vector<128x8xf32>
    %c0_9 = arith.constant 0 : index
    %c0_10 = arith.constant 0 : index
    %10 = vector.load %arg6[%c0_9, %c0_10] : memref<1x8xf32, #tpu.memory_space<vmem>>, vector<1x8xf32>
    %11 = vector.broadcast %10 : vector<1x8xf32> to vector<128x8xf32>
    %12 = arith.addf %9, %11 : vector<128x8xf32>
    %13 = vector.shape_cast %12 : vector<128x8xf32> to vector<1x128x8xf32>
    %14 = tpu.transpose %13, [0, 2, 1] : vector<1x128x8xf32> -> vector<1x8x128xf32>
    %c0_11 = arith.constant 0 : index
    %c0_12 = arith.constant 0 : index
    %c0_13 = arith.constant 0 : index
    %15 = vector.load %arg2[%c0_11, %c0_12, %c0_13] : memref<1x1x128xf32, #tpu.memory_space<vmem>>, vector<1x1x128xf32>
    %cst_14 = arith.constant 5.000000e-01 : f32
    %16 = vector.broadcast %cst_14 : f32 to vector<1x1x128xf32>
    %17 = arith.cmpf ogt, %15, %16 : vector<1x1x128xf32>
    %cst_15 = arith.constant -1.000000e+04 : f32
    %18 = vector.shape_cast %17 : vector<1x1x128xi1> to vector<1x1x128xi1>
    %19 = vector.broadcast %18 : vector<1x1x128xi1> to vector<1x8x128xi1>
    %20 = vector.broadcast %cst_15 : f32 to vector<1x8x128xf32>
    %21 = arith.select %19, %14, %20 : vector<1x8x128xi1>, vector<1x8x128xf32>
    %cst_16 = arith.constant dense<0xFF800000> : vector<1x8xf32>
    %22 = vector.multi_reduction <maximumf>, %21, %cst_16 [2] : vector<1x8x128xf32> to vector<1x8xf32>
    %23 = vector.shape_cast %22 : vector<1x8xf32> to vector<1x8x1xf32>
    %24 = vector.broadcast %23 : vector<1x8x1xf32> to vector<1x8x128xf32>
    %25 = arith.subf %21, %24 : vector<1x8x128xf32>
    %26 = math.exp %25 : vector<1x8x128xf32>
    %cst_17 = arith.constant dense<0.000000e+00> : vector<1x8xf32>
    %27 = vector.multi_reduction <add>, %26, %cst_17 [2] : vector<1x8x128xf32> to vector<1x8xf32>
    %28 = vector.shape_cast %27 : vector<1x8xf32> to vector<1x8x1xf32>
    %29 = tpu.reciprocal %28 : vector<1x8x1xf32> -> vector<1x8x1xf32>
    %30 = vector.broadcast %29 : vector<1x8x1xf32> to vector<1x8x128xf32>
    %31 = arith.mulf %26, %30 : vector<1x8x128xf32>
    %c0_18 = arith.constant 0 : index
    %c0_19 = arith.constant 0 : index
    %c0_20 = arith.constant 0 : index
    %32 = vector.load %arg8[%c0_18, %c0_19, %c0_20] : memref<1x8x128xf32, #tpu.memory_space<vmem>>, vector<1x8x128xf32>
    tpu.vector_store %arg8[%c0_18, %c0_19, %c0_20], %31 {strides = array<i32>} : memref<1x8x128xf32, #tpu.memory_space<vmem>>, vector<1x8x128xf32>,
    "tpu.trace_start"() <{level = 10 : i32, message = "bkf,bfe->bke"}> : () -> ()
    %cst_21 = arith.constant dense<0.000000e+00> : vector<1x8x128xf32>
    %33 = tpu.matmul %31, %0, %cst_21 {dimension_numbers = #tpu.dot_dimension_numbers<[2], [1], [1], [2], [0, 0, 0, 1, 1, 2], [0], [0]>} : vector<1x8x128xf32>, vector<1x128x128xf32>, vector<1x8x128xf32> -> vector<1x8x128xf32>
    "tpu.trace_stop"() : () -> ()
    %c0_22 = arith.constant 0 : index
    %c0_23 = arith.constant 0 : index
    %c0_24 = arith.constant 0 : index
    %34 = vector.load %arg7[%c0_22, %c0_23, %c0_24] : memref<1x8x128xf32, #tpu.memory_space<vmem>>, vector<1x8x128xf32>
    tpu.vector_store %arg7[%c0_22, %c0_23, %c0_24], %33 {strides = array<i32>} : memref<1x8x128xf32, #tpu.memory_space<vmem>>, vector<1x8x128xf32>,
    return
  }
  func.func @transform_0(%arg0: i32) -> (i32, i32, i32) {
    %c0_i32 = arith.constant 0 : i32
    %c0_i32_0 = arith.constant 0 : i32
    %c0_i32_1 = arith.constant 0 : i32
    return %arg0, %c0_i32, %c0_i32_0 : i32, i32, i32
  }
  func.func @transform_1(%arg0: i32) -> (i32, i32, i32) {
    %c0_i32 = arith.constant 0 : i32
    %c0_i32_0 = arith.constant 0 : i32
    %c0_i32_1 = arith.constant 0 : i32
    return %arg0, %c0_i32, %c0_i32_0 : i32, i32, i32
  }
  func.func @transform_2(%arg0: i32) -> (i32, i32) {
    %c0_i32 = arith.constant 0 : i32
    %c0_i32_0 = arith.constant 0 : i32
    %c0_i32_1 = arith.constant 0 : i32
    return %c0_i32, %c0_i32_0 : i32, i32
  }
  func.func @transform_3(%arg0: i32) -> (i32, i32) {
    %c0_i32 = arith.constant 0 : i32
    %c0_i32_0 = arith.constant 0 : i32
    %c0_i32_1 = arith.constant 0 : i32
    return %c0_i32, %c0_i32_0 : i32, i32
  }
  func.func @transform_4(%arg0: i32) -> (i32, i32) {
    %c0_i32 = arith.constant 0 : i32
    %c0_i32_0 = arith.constant 0 : i32
    %c0_i32_1 = arith.constant 0 : i32
    return %c0_i32, %c0_i32_0 : i32, i32
  }
  func.func @transform_5(%arg0: i32) -> (i32, i32) {
    %c0_i32 = arith.constant 0 : i32
    %c0_i32_0 = arith.constant 0 : i32
    %c0_i32_1 = arith.constant 0 : i32
    return %c0_i32, %c0_i32_0 : i32, i32
  }
  func.func @transform_6(%arg0: i32) -> (i32, i32, i32) {
    %c0_i32 = arith.constant 0 : i32
    %c0_i32_0 = arith.constant 0 : i32
    %c0_i32_1 = arith.constant 0 : i32
    return %arg0, %c0_i32, %c0_i32_0 : i32, i32, i32
  }
  func.func @transform_7(%arg0: i32) -> (i32, i32, i32) {
    %c0_i32 = arith.constant 0 : i32
    %c0_i32_0 = arith.constant 0 : i32
    %c0_i32_1 = arith.constant 0 : i32
    return %arg0, %c0_i32, %c0_i32_0 : i32, i32, i32
  }
}

</mosaic_0001>

<bundles_post_ra>
// kernel: tpu_custom_call.1
= control target key start
LH: loop header
LB: loop body
LE: loop exit
PB: predicated region body
PF: predicated region fallthrough
CT: control target
= control target key end

     0   :  { %13 = vsyncpa [#allocation3], 0  ;;  %s1985_s0 = inlined_call_operand.hbm [shape: f32[2,128,128], index: 0, kind: input, shape index: {}]   ;;  %s1986_s1 = inlined_call_operand.vmem [shape: f32[2,1,128], index: 1, kind: input, shape index: {}]   ;;  %s1987_s2 = inlined_call_operand.vmem [shape: f32[128,128], index: 2, kind: input, shape index: {}]   ;;  %s1988_s3 = inlined_call_operand.vmem [shape: f32[1,128], index: 3, kind: input, shape index: {}]   ;;  %s1989_s4 = inlined_call_operand.vmem [shape: f32[128,8], index: 4, kind: input, shape index: {}]   ;;  %s1990_s5 = inlined_call_operand.vmem [shape: f32[1,8], index: 5, kind: input, shape index: {}]   ;;  %s1991_s6 = inlined_call_operand.hbm [shape: f32[2,8,128], index: 6, kind: output, shape index: {0}]   ;;  %s1992_s7 = inlined_call_operand.hbm [shape: f32[2,8,128], index: 7, kind: output, shape index: {1}]  }
   0x1   :  { %15 = vsyncpa [#allocation3 + $0x1], 0 }
   0x2   :  { %16 = vsyncpa [#allocation4], 0 }
   0x3   :  { %18 = vsyncpa [#allocation4 + $0x1], 0 }
   0x4   :  { %19 = vsyncpa [#allocation7], 0 }
   0x5   :  { %21 = vsyncpa [#allocation7 + $0x1], 0  ;;  %s1562_s24 = smov 0   ;;  %s1564_s25 = smov 0  }
   0x6   :  { %s1566_s26 = smov 0   ;;  %s1568_s27 = smov 0  }
   0x7 LB: > { %s1583_s28 = sadd.s32 4294967295, %s1511_s27   ;;  %s955_s29 = sadd.s32 4294967294, %s1511_s27   ;;  %s1511_s27 = sphi %s1568_s27, %s2005_s27   ;;  %s1507_s26 = sphi %s1566_s26, %s2004_s26   ;;  %s1503_s25 = sphi %s1564_s25, %s2003_s25   ;;  %s1499_s24 = sphi %s1562_s24, %s2002_s24  }
   0x8   : > { %s1587_s30 = sadd.s32 1, %s1511_s27   ;;  %s34_s8 = sadd.s32 1, %s1507_s26 }
   0x9   : > { %s31_s9 = ssub.s32 %s1511_s27, %s1587_s30  ;;  %p41_p0 = scmp.ne.s32.totalorder %s1507_s26, %s1503_s25 }
   0xa   : > { %p32_p1 = scmp.eq.s32.totalorder %s31_s9, 0  ;;  %p42_p2 = scmp.eq.s32.totalorder %s1511_s27, 0 }
   0xb   : > { %p47_p3 = scmp.ne.s32.totalorder %s1503_s25, %s1499_s24  ;;  %p48_p4 = scmp.eq.s32.totalorder %s1583_s28, 0 }
   0xc   : > { %s1599_s10 = scalar_select %p32_p1, %s1507_s26, %s34_s8  }
   0xd   : > { %p1601_p5 = por %p42_p2, %p41_p0  ;;  %p1605_p6 = por %p48_p4, %p47_p3 }
   0xe   : > { %p181_p7 = scmp.eq.s32.totalorder %s1583_s28, 1  ;;  %p187_p8 = scmp.eq.s32.totalorder %s955_s29, 1 }
   0xf   : > { %p1307_p10 = scmp.lt.s32.totalorder %s1511_s27, 2  ;;  %s245_s15 = sand.u32 1, %s1507_s26  }
  0x10   : > { %p1612_p11 = por %p181_p7, %p41_p0  ;;  %p1616_p12 = por %p187_p8, %p47_p3 }
  0x11   : > { %s973_s16 = sshll.u32 %s1511_s27, 11  ;;  %s958_s17 = sshll.u32 %s245_s15, 7 }
  0x12   : > { %s1996_s13 = scalar_select %p1612_p11, 1, 0 }
  0x13   : > { %s1997_s14 = scalar_select %p1616_p12, 1, 0 }
  0x14   : > { %s1625_s20 = scalar_lea.hbm %s1985_s0, %s973_s16  ;;  %s249_s21 = scalar_lea.vmem [#allocation2], %s958_s17 }
  0x15   : > { %s256_s22 = sshll.u32 %s249_s21, 4  ;;  %p1629_p13 = pnand %p1307_p10, %p1601_p5  ;;  %s1633_s22 = int_to_ptr.vmem [resolvable:$true] %s256_s22 }
  0x16   : > { %s1635_s29 = scalar_lea.sflag [#allocation3], %s245_s15  ;;  %s1383_s8 = scalar_lea.hbm %s1625_s20, 2048 }
  0x17   : > { %p1384_p0 = scmp.ne.s32.totalorder %s1625_s20, %s1383_s8  ;;  %p1385_p1 = pneg %p1629_p13 }
  0x18   : > { %s1388_s16 = scalar_lea.hbm %s1985_s0, 4096  ;;  %p1389_p4 = scmp.lt.u32.totalorder %s1625_s20, %s1985_s0 }
  0x19   : > { %p1386_p2 = pnand %p1385_p1, %p1384_p0  ;;  %p1390_p5 = scmp.lt.u32.totalorder %s1388_s16, %s1383_s8 }
  0x1a   : > { %p1392_p8 = scmp.lt.u32.totalorder %s1383_s8, %s1625_s20 }
  0x1b   : > { %p1387_p3 = pneg %p1386_p2  ;;  %p1391_p7 = por %p1390_p5, %p1389_p4 }
  0x1d   : > { %p1393_p10 = por %p1392_p8, %p1391_p7 }
  0x1f   : > { %p1394_p9 = pnand %p1393_p10, %p1387_p3 }
  0x21   : > { %1397 = shalt.err (!%p1394_p9)
}
  0x22   : > { %s1398_s15 = scalar_lea.vmem %s1633_s22, 2048  ;;  %s1513_s19 = smov [#allocation2]  }
  0x23   : > { %p1399_p0 = scmp.ne.s32.totalorder %s1633_s22, %s1398_s15  ;;  %s1403_s21 = sshll.u32 %s1513_s19, 4  ;;  %s1404_s21 = int_to_ptr.vmem [resolvable:$false] %s1403_s21 }
  0x24   : > { %s1405_s9 = scalar_lea.vmem %s1404_s21, 4096  ;;  %p1406_p11 = scmp.lt.s32.totalorder %s1633_s22, %s1404_s21 }
  0x25   : > { %p1401_p2 = pnand %p1399_p0, %p1385_p1  ;;  %p1407_p4 = scmp.lt.s32.totalorder %s1405_s9, %s1398_s15 }
  0x27   : > { %p1402_p12 = pneg %p1401_p2  ;;  %p1408_p5 = por %p1407_p4, %p1406_p11 }
  0x29   : > { %p1409_p7 = pnand %p1408_p5, %p1402_p12 }
  0x2b   : > { %1412 = shalt.err (!%p1409_p7)
}
  0x2c   : > { %s1514_s8 = smov 128   ;;  %s1515_s11 = smov 8  }
  0x2d   : > { %1299 = dma.hbm_to_vmem [thread:$0]  (!%p1629_p13), %s1625_s20, 2048, %s1633_s22, %s1635_s29, %s1514_s8, %s1514_s8, %s1515_s11  }
  0x2e   : > { %p961_p9 = scmp.ge.s32.totalorder %s1511_s27, 1  ;;  %p270_p1 = scmp.lt.s32.totalorder %s1511_s27, 3 }
  0x30   : > { %p271_p3 = pnand %p961_p9, %p270_p1 }
  0x31   : > { %s1666_s16 = sand.u32 (!%p271_p3), 1, %s1503_s25  }
  0x32   : > { %274 = sbr.rel (%p271_p3) target bundleno = 1203 (0x4b3), region = 44  ;;  %s962_s17 = sshll.u32 (!%p271_p3), %s1666_s16, 7 }
  0x33   : > { %s277_s18 = scalar_lea.sflag (!%p271_p3), [#allocation3], %s1666_s16  ;;  %s1670_s15 = scalar_lea.vmem (!%p271_p3), [#allocation2], %s962_s17 }
  0x39   : > { %1486 = dma.done.wait (%p1605_p6), %s277_s18, 2048  }
  0x3a   : > { %1488 = vsyncadd (%p1605_p6), %s277_s18, 4294965248  ;;  %v338_v0 = vld [vmem:[%s1987_s2] sm:$0xff]  ;;  %v339_v1 = vld [vmem:[%s1987_s2 + $0x8] sm:$0xff]  ;;  %p319_p6 = scmp.lt.s32.totalorder %s1583_s28, 1  ;;  %vm1518_vm2 = vmmov 0   ;;  %s963_s12 = sshll.u32 %s1666_s16, 3 }
  0x3b   : > { %v340_v2 = vld [vmem:[%s1987_s2 + $0x10] sm:$0xff]  ;;  %v1202_v3 = vpack.c.bf16 %v339_v1, %v338_v0  ;;  %v341_v4 = vld [vmem:[%s1987_s2 + $0x18] sm:$0xff]  ;;  %v342_v6 = vld [vmem:[%s1987_s2 + $0x20] sm:$0xff]  ;;  %s318_s11 = scalar_lea.vmem [#allocation6], %s963_s12  ;;  %s969_s17 = sshll.u32 %s1583_s28, 7 }
  0x3c   : > { %v1206_v5 = vpack.c.bf16 %v341_v4, %v340_v2  ;;  %v343_v7 = vld [vmem:[%s1987_s2 + $0x28] sm:$0xff]  ;;  %v344_v8 = vld [vmem:[%s1987_s2 + $0x30] sm:$0xff]  ;;  %v345_v10 = vld [vmem:[%s1987_s2 + $0x38] sm:$0xff]  ;;  %s320_s19 = scalar_select %p319_p6, %s1583_s28, 1 }
  0x3d   : > { %1203 = vmatprep.subr.bf16.mxu0 %v1202_v3  ;;  %v1210_v9 = vpack.c.bf16 %v343_v7, %v342_v6  ;;  %v1701_v11 = vld [vmem:[%s1670_s15] sm:$0xff]  ;;  %v1704_v12 = vld [vmem:[%s1670_s15 + $0x8] sm:$0xff]  ;;  %v1710_v14 = vld [vmem:[%s1670_s15 + $0x10] sm:$0xff]  ;;  %v1214_v28 = vpack.c.bf16 %v345_v10, %v344_v8  ;;  %s1914_s22 = scalar_lea.hbm %s1992_s7, %s969_s17  ;;  %s844_s23 = sshll.u32 %s318_s11, 4  ;;  %s845_s23 = int_to_ptr.vmem [resolvable:$true] %s844_s23 }
  0x3e   : > { %1205 = vmatpush3.bf16.msra.mxu0 %v1202_v3  ;;  %1087 = vmatprep.mubr.f32.mxu0 %v1701_v11  ;;  %v1267_v13 = vpack.c.bf16 %v1704_v12, %v1701_v11  ;;  %v1713_v15 = vld [vmem:[%s1670_s15 + $0x18] sm:$0xff]  ;;  %v1716_v16 = vld [vmem:[%s1670_s15 + $0x20] sm:$0xff]  ;;  %v1721_v18 = vld [vmem:[%s1670_s15 + $0x28] sm:$0xff]  ;;  %s321_s8 = scalar_lea.vmem %s1986_s1, %s320_s19  ;;  %s818_s29 = scalar_lea.sflag [#allocation7], %s1666_s16 }
  0x3f   : > { %1207 = vmatprep.subr.bf16.mxu0 %v1206_v5  ;;  %v1270_v17 = vpack.c.bf16 %v1713_v15, %v1710_v14  ;;  %v1724_v19 = vld [vmem:[%s1670_s15 + $0x30] sm:$0xff]  ;;  %v1727_v20 = vld [vmem:[%s1670_s15 + $0x38] sm:$0xff]  ;;  %v346_v21 = vld [vmem:[%s1987_s2 + $0x40] sm:$0xff]  ;;  %v1273_v23 = vpack.c.bf16 %v1721_v18, %v1716_v16  ;;  %p1999_p12 = scmp.ne.s32.totalorder %s1996_s13, 0  ;;  %s1520_s19 = smov [#allocation6]  }
  0x40   : > { %v347_v22 = vld [vmem:[%s1987_s2 + $0x48] sm:$0xff]  ;;  %v1276_v24 = vpack.c.bf16 %v1727_v20, %v1724_v19  ;;  %v1740_v25 = vld [vmem:[%s1670_s15 + $0x40] sm:$0xff]  ;;  %v1746_v27 = vld [vmem:[%s1670_s15 + $0x50] sm:$0xff]  ;;  %s1417_s21 = sshll.u32 %s1520_s19, 4  ;;  %s1418_s21 = int_to_ptr.vmem [resolvable:$false] %s1417_s21 }
  0x41   : > { %v1743_v26 = vld [vmem:[%s1670_s15 + $0x48] sm:$0xff]  ;;  %v1751_v30 = vld [vmem:[%s1670_s15 + $0x58] sm:$0xff]  ;;  %v1754_v31 = vld [vmem:[%s1670_s15 + $0x60] sm:$0xff]  ;;  %v1218_v44 = vpack.c.bf16 %v347_v22, %v346_v21  ;;  %s1419_s9 = scalar_lea.vmem %s1418_s21, 256  ;;  %p1420_p10 = scmp.lt.s32.totalorder %s845_s23, %s1418_s21 }
  0x42   : > { %1209 = vmatpush3.bf16.msra.mxu0 %v1206_v5  ;;  %v1279_v29 = vpack.c.bf16 %v1743_v26, %v1740_v25  ;;  %v1757_v32 = vld [vmem:[%s1670_s15 + $0x68] sm:$0xff]  ;;  %v1282_v33 = vpack.c.bf16 %v1751_v30, %v1746_v27  ;;  %v1764_v35 = vld [vmem:[%s1670_s15 + $0x70] sm:$0xff]  ;;  %v1767_v36 = vld [vmem:[%s1670_s15 + $0x78] sm:$0xff]  ;;  %s1413_s15 = scalar_lea.vmem %s845_s23, 128 }
  0x43   : > { %1211 = vmatprep.subr.bf16.mxu0 %v1210_v9  ;;  %v1285_v34 = vpack.c.bf16 %v1757_v32, %v1754_v31  ;;  %v522_v37 = vld [vmem:[%s1989_s4] sm:$0xff]  ;;  %v1288_v38 = vpack.c.bf16 %v1767_v36, %v1764_v35  ;;  %v523_v39 = vld [vmem:[%s1989_s4 + $0x8] sm:$0xff]  ;;  %v524_v40 = vld [vmem:[%s1989_s4 + $0x10] sm:$0xff]  ;;  %p1414_p11 = scmp.ne.s32.totalorder %s845_s23, %s1413_s15  ;;  %p1421_p0 = scmp.lt.s32.totalorder %s1419_s9, %s1413_s15 }
  0x44   : > { %v525_v41 = vld [vmem:[%s1989_s4 + $0x18] sm:$0xff]  ;;  %v1234_v42 = vpack.c.bf16 %v523_v39, %v522_v37  ;;  %v526_v45 = vld [vmem:[%s1989_s4 + $0x20] sm:$0xff]  ;;  %v527_v46 = vld [vmem:[%s1989_s4 + $0x28] sm:$0xff] }
  0x45   : > { %v1238_v43 = vpack.c.bf16 %v525_v41, %v524_v40  ;;  %v348_v47 = vld [vmem:[%s1987_s2 + $0x50] sm:$0xff]  ;;  %v349_v48 = vld [vmem:[%s1987_s2 + $0x58] sm:$0xff]  ;;  %v1242_v49 = vpack.c.bf16 %v527_v46, %v526_v45  ;;  %v350_v53 = vld [vmem:[%s1987_s2 + $0x60] sm:$0xff]  ;;  %p1415_p13 = pnand %p1414_p11, %p1999_p12  ;;  %p1422_p2 = por %p1421_p0, %p1420_p10 }
  0x46   : > { %1213 = vmatpush3.bf16.msra.mxu0 %v1210_v9  ;;  %1235 = vmatprep.subr.bf16.mxu1 %v1234_v42  ;;  %v1222_v50 = vpack.c.bf16 %v349_v48, %v348_v47  ;;  %v528_v51 = vld [vmem:[%s1989_s4 + $0x30] sm:$0xff]  ;;  %v529_v52 = vld [vmem:[%s1989_s4 + $0x38] sm:$0xff]  ;;  %v351_v54 = vld [vmem:[%s1987_s2 + $0x68] sm:$0xff] }
  0x47   : > { %1215 = vmatprep.subr.bf16.mxu0 %v1214_v28  ;;  %1237 = vmatpush3.bf16.msra.mxu1 %v1234_v42  ;;  %v1246_v55 = vpack.c.bf16 %v529_v52, %v528_v51  ;;  %v1226_v56 = vpack.c.bf16 %v351_v54, %v350_v53  ;;  %v352_v57 = vld [vmem:[%s1987_s2 + $0x70] sm:$0xff]  ;;  %v353_v58 = vld [vmem:[%s1987_s2 + $0x78] sm:$0xff]  ;;  %v530_v60 = vld [vmem:[%s1989_s4 + $0x40] sm:$0xff]  ;;  %p1416_p8 = pneg %p1415_p13 }
  0x48   : > { %1239 = vmatprep.subr.bf16.mxu1 %v1238_v43  ;;  %v1230_v59 = vpack.c.bf16 %v353_v58, %v352_v57  ;;  %v531_v61 = vld [vmem:[%s1989_s4 + $0x48] sm:$0xff]  ;;  %v532_v63 = vld [vmem:[%s1989_s4 + $0x50] sm:$0xff]  ;;  %v533_v0 = vld [vmem:[%s1989_s4 + $0x58] sm:$0xff] }
  0x49   : > { %v1250_v62 = vpack.c.bf16 %v531_v61, %v530_v60  ;;  %v1254_v1 = vpack.c.bf16 %v533_v0, %v532_v63  ;;  %v534_v2 = vld [vmem:[%s1989_s4 + $0x60] sm:$0xff]  ;;  %v535_v3 = vld [vmem:[%s1989_s4 + $0x68] sm:$0xff]  ;;  %v536_v5 = vld [vmem:[%s1989_s4 + $0x70] sm:$0xff]  ;;  %p1423_p4 = pnand %p1422_p2, %p1416_p8 }
  0x4a   : > { %1217 = vmatpush3.bf16.msra.mxu0 %v1214_v28  ;;  %v1258_v4 = vpack.c.bf16 %v535_v3, %v534_v2  ;;  %v537_v6 = vld [vmem:[%s1989_s4 + $0x78] sm:$0xff]  ;;  %v1855_v8 = vld [vmem:[%s1988_s3] ss:$0 sm:$0xff] }
  0x4b   : > { %1219 = vmatprep.subr.bf16.mxu0 %v1218_v44  ;;  %1241 = vmatpush3.bf16.msra.mxu1 %v1238_v43  ;;  %v1262_v7 = vpack.c.bf16 %v537_v6, %v536_v5 }
  0x4c   : > { %1243 = vmatprep.subr.bf16.mxu1 %v1242_v49 }
  0x4e   : > { %1221 = vmatpush3.bf16.msra.mxu0 %v1218_v44 }
  0x4f   : > { %1223 = vmatprep.subr.bf16.mxu0 %v1222_v50  ;;  %1245 = vmatpush3.bf16.msra.mxu1 %v1242_v49 }
  0x50   : > { %1247 = vmatprep.subr.bf16.mxu1 %v1246_v55 }
  0x52   : > { %1225 = vmatpush3.bf16.msra.mxu0 %v1222_v50 }
  0x53   : > { %1227 = vmatprep.subr.bf16.mxu0 %v1226_v56  ;;  %1249 = vmatpush3.bf16.msra.mxu1 %v1246_v55 }
  0x54   : > { %1251 = vmatprep.subr.bf16.mxu1 %v1250_v62 }
  0x56   : > { %1229 = vmatpush3.bf16.msra.mxu0 %v1226_v56 }
  0x57   : > { %1231 = vmatprep.subr.bf16.mxu0 %v1230_v59  ;;  %1253 = vmatpush3.bf16.msra.mxu1 %v1250_v62 }
  0x58   : > { %1255 = vmatprep.subr.bf16.mxu1 %v1254_v1 }
  0x5a   : > { %1233 = vmatpush3.bf16.msra.mxu0 %v1230_v59 }
  0x5b   : > { %1257 = vmatpush3.bf16.msra.mxu1 %v1254_v1 }
  0x5c   : > { %1259 = vmatprep.subr.bf16.mxu1 %v1258_v4 }
  0x5d   : > { %1088 = vmatmul.mubr.f32.vlgmr.msra.gmra.mrb[0].mxu0 %v1704_v12 }
  0x5e   : > { %1090 = vmatprep.mubr.f32.mxu0 %v1710_v14 }
  0x5f   : > { %1261 = vmatpush3.bf16.msra.mxu1 %v1258_v4 }
  0x60   : > { %1263 = vmatprep.subr.bf16.mxu1 %v1262_v7 }
  0x61   : > { %1091 = vmatmul.mubr.f32.gmra.mrb[2].mxu0 %v1713_v15  ;;  %v1519_v15 = vmov 0.0  }
  0x62   : > { %1093 = vmatprep.mubr.f32.mxu0 %v1716_v16 }
  0x63   : > { %1265 = vmatpush3.bf16.msra.mxu1 %v1262_v7 }
  0x65   : > { %1094 = vmatmul.mubr.f32.gmra.mrb[4].mxu0 %v1721_v18 }
  0x66   : > { %1096 = vmatprep.mubr.f32.mxu0 %v1724_v19 }
  0x69   : > { %1097 = vmatmul.mubr.f32.gmra.mrb[6].mxu0 %v1727_v20 }
  0x6a   : > { %1099 = vmatprep.mubr.f32.mxu0 %v1740_v25 }
  0x6d   : > { %1100 = vmatmul.mubr.f32.gmra.mrb[8].mxu0 %v1743_v26 }
  0x6e   : > { %1102 = vmatprep.mubr.f32.mxu0 %v1746_v27 }
  0x71   : > { %1103 = vmatmul.mubr.f32.gmra.mrb[10].mxu0 %v1751_v30 }
  0x72   : > { %1105 = vmatprep.mubr.f32.mxu0 %v1754_v31 }
  0x75   : > { %1106 = vmatmul.mubr.f32.gmra.mrb[12].mxu0 %v1757_v32 }
  0x76   : > { %1108 = vmatprep.mubr.f32.mxu0 %v1764_v35 }
  0x79   : > { %1109 = vmatmul.mubr.f32.gmra.mrb[14].mxu0 %v1767_v36 }
  0x7a   : > { %1199 = vmatprep.mubr.msk.f32.mxu0 %vm1518_vm2, %v1519_v15 }
 0x130   : > { %v1089_v9 = vpop.f32.mrb[0].mxu0 }
 0x131   : > { %v433_v10 = vadd.f32 %v1089_v9, %v1855_v8  ;;  %v427_v21 = vpop.f32.mrb[1].mxu0 }
 0x132   : > { %v428_v22 = vadd.f32 %v1855_v8, %v427_v21 }
 0x134   : > { %1347 = vtanh.f32 %v428_v22  ;;  %v1092_v28 = vpop.f32.mrb[2].mxu0 }
 0x135   : > { %1349 = vtanh.f32 %v433_v10  ;;  %v443_v37 = vadd.f32 %v1092_v28, %v1855_v8  ;;  %v437_v39 = vpop.f32.mrb[3].mxu0 }
 0x136   : > { %v438_v40 = vadd.f32 %v1855_v8, %v437_v39 }
 0x137   : > { %1351 = vtanh.f32 %v443_v37 }
 0x138   : > { %1353 = vtanh.f32 %v438_v40  ;;  %v1095_v41 = vpop.f32.mrb[4].mxu0 }
 0x139   : > { %v453_v42 = vadd.f32 %v1095_v41, %v1855_v8  ;;  %v447_v43 = vpop.f32.mrb[5].mxu0 }
 0x13a   : > { %v448_v44 = vadd.f32 %v1855_v8, %v447_v43 }
 0x13b   : > { %1355 = vtanh.f32 %v453_v42 }
 0x13c   : > { %1357 = vtanh.f32 %v448_v44  ;;  %v1098_v45 = vpop.f32.mrb[6].mxu0 }
 0x13d   : > { %v463_v46 = vadd.f32 %v1098_v45, %v1855_v8  ;;  %v457_v47 = vpop.f32.mrb[7].mxu0 }
 0x13e   : > { %v1348_v48 = vpop.eup %1347  ;;  %v458_v49 = vadd.f32 %v1855_v8, %v457_v47 }
 0x13f   : > { %v1350_v50 = vpop.eup %1349  ;;  %1143 = vmatprep.mubr.f32.mxu1 %v1348_v48  ;;  %1359 = vtanh.f32 %v463_v46 }
 0x140   : > { %1144 = vmatmul.mubr.f32.vlgmr.msra.gmra.mrb[0].mxu1 %v1350_v50  ;;  %1361 = vtanh.f32 %v458_v49  ;;  %v1101_v51 = vpop.f32.mrb[8].mxu0 }
 0x141   : > { %v1352_v52 = vpop.eup %1351  ;;  %v473_v53 = vadd.f32 %v1101_v51, %v1855_v8  ;;  %v467_v54 = vpop.f32.mrb[9].mxu0 }
 0x142   : > { %v1354_v55 = vpop.eup %1353  ;;  %v468_v56 = vadd.f32 %v1855_v8, %v467_v54 }
 0x143   : > { %1146 = vmatprep.mubr.f32.mxu1 %v1354_v55  ;;  %1363 = vtanh.f32 %v473_v53 }
 0x144   : > { %1147 = vmatmul.mubr.f32.gmra.mrb[2].mxu1 %v1352_v52  ;;  %1365 = vtanh.f32 %v468_v56  ;;  %v1104_v57 = vpop.f32.mrb[10].mxu0 }
 0x145   : > { %v1356_v58 = vpop.eup %1355  ;;  %v483_v59 = vadd.f32 %v1104_v57, %v1855_v8  ;;  %v477_v60 = vpop.f32.mrb[11].mxu0 }
 0x146   : > { %v1358_v61 = vpop.eup %1357  ;;  %v478_v62 = vadd.f32 %v1855_v8, %v477_v60 }
 0x147   : > { %1149 = vmatprep.mubr.f32.mxu1 %v1358_v61  ;;  %1367 = vtanh.f32 %v483_v59 }
 0x148   : > { %1150 = vmatmul.mubr.f32.gmra.mrb[4].mxu1 %v1356_v58  ;;  %1369 = vtanh.f32 %v478_v62  ;;  %v1107_v63 = vpop.f32.mrb[12].mxu0 }
 0x149   : > { %v1360_v0 = vpop.eup %1359  ;;  %v493_v1 = vadd.f32 %v1107_v63, %v1855_v8  ;;  %v487_v2 = vpop.f32.mrb[13].mxu0 }
 0x14a   : > { %v1362_v3 = vpop.eup %1361  ;;  %v488_v4 = vadd.f32 %v1855_v8, %v487_v2 }
 0x14b   : > { %1152 = vmatprep.mubr.f32.mxu1 %v1362_v3  ;;  %1371 = vtanh.f32 %v493_v1 }
 0x14c   : > { %1153 = vmatmul.mubr.f32.gmra.mrb[6].mxu1 %v1360_v0  ;;  %1373 = vtanh.f32 %v488_v4  ;;  %v1110_v5 = vpop.f32.mrb[14].mxu0 }
 0x14d   : > { %v1364_v6 = vpop.eup %1363  ;;  %v503_v7 = vadd.f32 %v1110_v5, %v1855_v8  ;;  %v497_v9 = vpop.f32.mrb[15].mxu0 }
 0x14e   : > { %v1366_v10 = vpop.eup %1365  ;;  %v498_v21 = vadd.f32 %v1855_v8, %v497_v9  ;;  %v966_v8 = vld [vmem:[%s1990_s5] ss:$0 sm:$0xff] }
 0x14f   : > { %1155 = vmatprep.mubr.f32.mxu1 %v1366_v10  ;;  %1375 = vtanh.f32 %v503_v7 }
 0x150   : > { %1156 = vmatmul.mubr.f32.gmra.mrb[8].mxu1 %v1364_v6  ;;  %1377 = vtanh.f32 %v498_v21  ;;  %v725_v21 = vlaneseq }
 0x151   : > { %v1368_v22 = vpop.eup %1367 }
 0x152   : > { %v1370_v28 = vpop.eup %1369 }
 0x153   : > { %1158 = vmatprep.mubr.f32.mxu1 %v1370_v28  ;;  %v726_v28 = vshrl.u32 %v725_v21, 7 }
 0x154   : > { %1159 = vmatmul.mubr.f32.gmra.mrb[10].mxu1 %v1368_v22  ;;  %v722_v22 = vld [vmem:[%s321_s8] sm:$0x1] }
 0x155   : > { %v1372_v37 = vpop.eup %1371  ;;  %vm723_vm0 = vcmp.gt.f32.partialorder %v722_v22, 0.5 }
 0x156   : > { %v1374_v39 = vpop.eup %1373 }
 0x157   : > { %1161 = vmatprep.mubr.f32.mxu1 %v1374_v39  ;;  %v1516_v39 = vmov 0  }
 0x158   : > { %1162 = vmatmul.mubr.f32.gmra.mrb[12].mxu1 %v1372_v37  ;;  %v727_v37 = vsub.s32 0, %v726_v28 }
 0x159   : > { %v1376_v40 = vpop.eup %1375 }
 0x15a   : > { %v1378_v41 = vpop.eup %1377 }
 0x15b   : > { %1164 = vmatprep.mubr.f32.mxu1 %v1378_v41 }
 0x15c   : > { %1165 = vmatmul.mubr.f32.gmra.mrb[14].mxu1 %v1376_v40  ;;  %v724_v40 = vsel %vm723_vm0, 1, %v1516_v39 }
 0x15d   : > { %v728_v41 = vrot.slane %v724_v40, %v727_v37 }
 0x15f   : > { %vm729_vm1 = vcmp.eq.s32.totalorder %v728_v41, 1 }
 0x213   : > { %v1145_v42 = vpop.f32.mrb[0].mxu1 }
 0x214   : > { %v611_v43 = vpop.f32.mrb[1].mxu1  ;;  %v617_v47 = vadd.f32 %v1145_v42, %v966_v8 }
 0x215   : > { %v612_v44 = vadd.f32 %v966_v8, %v611_v43 }
 0x217   : > { %690 = vxpose.xlu0.b32.start [1/16] (narrow) %v612_v44, 8  ;;  %v1148_v45 = vpop.f32.mrb[2].mxu1 }
 0x218   : > { %v621_v46 = vpop.f32.mrb[3].mxu1  ;;  %v627_v53 = vadd.f32 %v1148_v45, %v966_v8 }
 0x219   : > { %v622_v50 = vadd.f32 %v966_v8, %v621_v46 }
 0x21b   : > { %691 = vxpose.xlu0.b32.cont [2/16] (narrow) %v617_v47, 8  ;;  %v1151_v48 = vpop.f32.mrb[4].mxu1 }
 0x21c   : > { %v631_v49 = vpop.f32.mrb[5].mxu1  ;;  %v637_v59 = vadd.f32 %v1151_v48, %v966_v8 }
 0x21d   : > { %v632_v56 = vadd.f32 %v966_v8, %v631_v49 }
 0x21f   : > { %692 = vxpose.xlu0.b32.cont [3/16] (narrow) %v622_v50, 8  ;;  %v1154_v51 = vpop.f32.mrb[6].mxu1 }
 0x220   : > { %v641_v52 = vpop.f32.mrb[7].mxu1  ;;  %v647_v1 = vadd.f32 %v1154_v51, %v966_v8 }
 0x221   : > { %v642_v62 = vadd.f32 %v966_v8, %v641_v52 }
 0x223   : > { %693 = vxpose.xlu0.b32.cont [4/16] (narrow) %v627_v53, 8  ;;  %v1157_v54 = vpop.f32.mrb[8].mxu1 }
 0x224   : > { %v651_v55 = vpop.f32.mrb[9].mxu1  ;;  %v657_v3 = vadd.f32 %v1157_v54, %v966_v8 }
 0x225   : > { %v652_v2 = vadd.f32 %v966_v8, %v651_v55 }
 0x227   : > { %694 = vxpose.xlu0.b32.cont [5/16] (narrow) %v632_v56, 8  ;;  %v1160_v57 = vpop.f32.mrb[10].mxu1 }
 0x228   : > { %v661_v58 = vpop.f32.mrb[11].mxu1  ;;  %v667_v5 = vadd.f32 %v1160_v57, %v966_v8 }
 0x229   : > { %v662_v4 = vadd.f32 %v966_v8, %v661_v58 }
 0x22b   : > { %695 = vxpose.xlu0.b32.cont [6/16] (narrow) %v637_v59, 8  ;;  %v1163_v60 = vpop.f32.mrb[12].mxu1 }
 0x22c   : > { %v671_v61 = vpop.f32.mrb[13].mxu1  ;;  %v677_v7 = vadd.f32 %v1163_v60, %v966_v8 }
 0x22d   : > { %v672_v6 = vadd.f32 %v966_v8, %v671_v61 }
 0x22f   : > { %696 = vxpose.xlu0.b32.cont [7/16] (narrow) %v642_v62, 8  ;;  %v1166_v63 = vpop.f32.mrb[14].mxu1 }
 0x230   : > { %v681_v0 = vpop.f32.mrb[15].mxu1  ;;  %v687_v10 = vadd.f32 %v1166_v63, %v966_v8 }
 0x231   : > { %v682_v9 = vadd.f32 %v966_v8, %v681_v0  ;;  %v1517_v8 = vmov 0.0|0.0  }
 0x232   : > { %1266 = vmatprep.subr.bf16.mxu0 %v1517_v8 }
 0x233   : > { %697 = vxpose.xlu0.b32.cont [8/16] (narrow) %v647_v1, 8  ;;  %1268 = vmatpush3.bf16.msra.mxu0 %v1267_v13 }
 0x234   : > { %1269 = vmatprep.subr.bf16.mxu0 %v1517_v8 }
 0x237   : > { %698 = vxpose.xlu0.b32.cont [9/16] (narrow) %v652_v2, 8  ;;  %1271 = vmatpush3.bf16.msra.mxu0 %v1270_v17 }
 0x238   : > { %1272 = vmatprep.subr.bf16.mxu0 %v1517_v8 }
 0x23b   : > { %699 = vxpose.xlu0.b32.cont [10/16] (narrow) %v657_v3, 8  ;;  %1274 = vmatpush3.bf16.msra.mxu0 %v1273_v23 }
 0x23c   : > { %1275 = vmatprep.subr.bf16.mxu0 %v1517_v8 }
 0x23f   : > { %700 = vxpose.xlu0.b32.cont [11/16] (narrow) %v662_v4, 8  ;;  %1277 = vmatpush3.bf16.msra.mxu0 %v1276_v24 }
 0x240   : > { %1278 = vmatprep.subr.bf16.mxu0 %v1517_v8 }
 0x243   : > { %701 = vxpose.xlu0.b32.cont [12/16] (narrow) %v667_v5, 8  ;;  %1280 = vmatpush3.bf16.msra.mxu0 %v1279_v29 }
 0x244   : > { %1281 = vmatprep.subr.bf16.mxu0 %v1517_v8 }
 0x247   : > { %702 = vxpose.xlu0.b32.cont [13/16] (narrow) %v672_v6, 8  ;;  %1283 = vmatpush3.bf16.msra.mxu0 %v1282_v33 }
 0x248   : > { %1284 = vmatprep.subr.bf16.mxu0 %v1517_v8 }
 0x24b   : > { %703 = vxpose.xlu0.b32.cont [14/16] (narrow) %v677_v7, 8  ;;  %1286 = vmatpush3.bf16.msra.mxu0 %v1285_v34 }
 0x24c   : > { %1287 = vmatprep.subr.bf16.mxu0 %v1517_v8 }
 0x24f   : > { %704 = vxpose.xlu0.b32.cont [15/16] (narrow) %v682_v9, 8  ;;  %1289 = vmatpush3.bf16.msra.mxu0 %v1288_v38 }
 0x253   : > { %705 = vxpose.xlu0.b32.end [16/16] (narrow) %v687_v10, 8 }
 0x297   : > { %v706_v42 = vpop.trf.xlu0 }
 0x298   : > { %v730_v43 = vsel %vm729_vm1, %v706_v42, -10000.0 }
 0x299   : > { %731 = vmax.xlane.f32.xlu1 %v730_v43 }
 0x326   : > { %v732_v11 = vpop.xlane.xlu1 %731 }
 0x327   : > { %v733_v12 = vsub.f32 %v730_v43, %v732_v11 }
 0x329   : > { %v734_v13 = vmul.f32 1.442695, %v733_v12 }
 0x32b   : > { %1379 = vpow2.f32 %v734_v13 }
 0x335   : > { %v1380_v14 = vpop.eup %1379 }
 0x336   : > { %736 = vadd.xlane.f32.xlu1 %v1380_v14 }
 0x3c3   : > { %v737_v16 = vpop.xlane.xlu1 %736 }
 0x3c4   : > { %1381 = vrcp.f32 %v737_v16 }
 0x3ce   : > { %v1382_v17 = vpop.eup %1381 }
 0x3cf   : > { %v739_v18 = vmul.f32 %v1382_v17, %v1380_v14 }
 0x3d1   : > { %1200 = vmatmul.mubr.f32.vlgmr.msra.gmra.mrb[16].mxu0 %v739_v18  ;;  %740 = vst [vmem:[%s318_s11] sm:$0xff] %v739_v18 }
 0x3d2   : > { %1426 = shalt.err (!%p1423_p4)
}
 0x3d3   : > { %s1427_s8 = scalar_lea.hbm %s1914_s22, 128  ;;  %s1431_s20 = scalar_lea.hbm %s1992_s7, 256 }
 0x3d4   : > { %p1428_p5 = scmp.ne.s32.totalorder %s1914_s22, %s1427_s8  ;;  %p1432_p1 = scmp.lt.u32.totalorder %s1914_s22, %s1992_s7 }
 0x3d5   : > { %p1433_p3 = scmp.lt.u32.totalorder %s1431_s20, %s1427_s8  ;;  %p1435_p11 = scmp.lt.u32.totalorder %s1427_s8, %s1914_s22 }
 0x3d6   : > { %p1429_p7 = pnand %p1428_p5, %p1999_p12 }
 0x3d7   : > { %p1434_p6 = por %p1433_p3, %p1432_p1 }
 0x3d8   : > { %p1430_p9 = pneg %p1429_p7 }
 0x3d9   : > { %p1436_p13 = por %p1435_p11, %p1434_p6 }
 0x3db   : > { %p1437_p8 = pnand %p1436_p13, %p1430_p9 }
 0x3dd   : > { %1440 = shalt.err (!%p1437_p8)
}
 0x3de   : > { %1293 = dma.vmem_to_hbm [thread:$0]  (%p1999_p12), %s845_s23, 128, %s1914_s22, %s818_s29  }
 0x3df   : > { %s311_s15 = scalar_lea.vmem [#allocation5], %s963_s12  ;;  %s1943_s8 = scalar_lea.hbm %s1991_s6, %s969_s17 }
 0x3e0   : > { %s831_s9 = sshll.u32 %s311_s15, 4  ;;  %s813_s20 = scalar_lea.sflag [#allocation4], %s1666_s16  ;;  %s1936_s9 = int_to_ptr.vmem [resolvable:$true] %s831_s9 }
 0x3e1   : > { %s1441_s19 = scalar_lea.vmem %s1936_s9, 128  ;;  %s1521_s12 = smov [#allocation5]  }
 0x3e2   : > { %p1442_p10 = scmp.ne.s32.totalorder %s1936_s9, %s1441_s19  ;;  %s1445_s22 = sshll.u32 %s1521_s12, 4  ;;  %s1446_s22 = int_to_ptr.vmem [resolvable:$false] %s1445_s22 }
 0x3e3   : > { %s1447_s28 = scalar_lea.vmem %s1446_s22, 256  ;;  %p1448_p4 = scmp.lt.s32.totalorder %s1936_s9, %s1446_s22 }
 0x3e4   : > { %p1443_p0 = pnand %p1442_p10, %p1999_p12  ;;  %p1449_p5 = scmp.lt.s32.totalorder %s1447_s28, %s1441_s19 }
 0x3e6   : > { %p1444_p2 = pneg %p1443_p0  ;;  %p1450_p7 = por %p1449_p5, %p1448_p4 }
 0x3e8   : > { %p1451_p9 = pnand %p1450_p7, %p1444_p2 }
 0x4a4   : > { %v807_v19 = vpop.f32.mrb[16].mxu0 }
 0x4a5   : > { %811 = vst [vmem:[%s311_s15] sm:$0xff] %v807_v19  ;;  %v1201_v20 = vpop.f32.mrb[17].mxu0 }
 0x4a6   : > { %1454 = shalt.err (!%p1451_p9)
}
 0x4a7   : > { %s1455_s16 = scalar_lea.hbm %s1943_s8, 128  ;;  %s1459_s29 = scalar_lea.hbm %s1991_s6, 256 }
 0x4a8   : > { %p1456_p1 = scmp.ne.s32.totalorder %s1943_s8, %s1455_s16  ;;  %p1460_p11 = scmp.lt.u32.totalorder %s1943_s8, %s1991_s6 }
 0x4a9   : > { %p1461_p13 = scmp.lt.u32.totalorder %s1459_s29, %s1455_s16  ;;  %p1463_p10 = scmp.lt.u32.totalorder %s1455_s16, %s1943_s8 }
 0x4aa   : > { %p1457_p3 = pnand %p1456_p1, %p1999_p12 }
 0x4ab   : > { %p1462_p8 = por %p1461_p13, %p1460_p11 }
 0x4ac   : > { %p1458_p6 = pneg %p1457_p3 }
 0x4ad   : > { %p1464_p0 = por %p1463_p10, %p1462_p8 }
 0x4af   : > { %p1465_p2 = pnand %p1464_p0, %p1458_p6 }
 0x4b1   : > { %1468 = shalt.err (!%p1465_p2)
}
 0x4b2   : > { %1292 = dma.vmem_to_hbm [thread:$0]  (%p1999_p12), %s1936_s9, 128, %s1943_s8, %s813_s20  }
 0x4b3 PF: > { %s856_s11 = sand.u32 1, %s1499_s24   ;;  %p2000_p4 = scmp.ne.s32.totalorder %s1997_s14, 0 }
 0x4b4   : > { %p2001_p5 = scmp.ge.s32.totalorder %s1511_s27, 2  ;;  %s857_s18 = scalar_lea.sflag [#allocation4], %s856_s11 }
 0x4b6   : > { %p1301_p7 = pnand %p2001_p5, %p2000_p4 }
 0x4b8   : > { %1490 = dma.done.wait (!%p1301_p7), %s857_s18, 128  }
 0x4b9   : > { %1492 = vsyncadd (!%p1301_p7), %s857_s18, 4294967168  ;;  %s866_s19 = scalar_lea.sflag [#allocation7], %s856_s11 }
 0x4ba   : > { %1494 = dma.done.wait (!%p1301_p7), %s866_s19, 128  }
 0x4bb   : > { %1496 = vsyncadd (!%p1301_p7), %s866_s19, 4294967168  ;;  %p24_p12 = scmp.ge.s32.totalorder %s1587_s30, 4   ;;  %s2002_s24 = smov %s1503_s25 }
 0x4bc   : > { %s2003_s25 = smov %s1507_s26  ;;  %s2004_s26 = smov %s1599_s10 }
 0x4bd   : > { %s2005_s27 = smov %s1587_s30  ;;  %26 = sbr.rel (!%p24_p12) target bundleno = 7 (0x7), region = 109 }
 0x4c4   :  { %871 = vsyncpa [#allocation3], 1 }
 0x4c5   :  { %873 = vsyncpa [#allocation3 + $0x1], 1 }
 0x4c6   :  { %874 = vsyncpa [#allocation4], 1 }
 0x4c7   :  { %876 = vsyncpa [#allocation4 + $0x1], 1 }
 0x4c8   :  { %877 = vsyncpa [#allocation7], 1 }
 0x4c9   :  { %879 = vsyncpa [#allocation7 + $0x1], 1 }

</bundles_post_ra>
